<compile_context>
chip_gen: v7x
topology: tpu7x:2x2x1
jax: 0.10.0
libtpu: 0.0.40
codegen_flags: <defaults>
</compile_context>

<pallas_src>
import functools

import jax
import jax.numpy as jnp
from jax.experimental import pallas as pl
from jax.experimental.pallas import tpu as pltpu

LANE = 128                       # output channels padded to the TPU lane width
NEG_SLOPE = 0.2
BN_EPS = 1e-5
MAX_TM = 1024                    # upper cap on rows per grid step
VMEM_BUDGET = 24 * 1024 * 1024   # tile-sizing budget (headroom under 32 MiB scoped)
VMEM_LIMIT = 32 * 1024 * 1024    # scoped VMEM limit passed to Mosaic


def _round_up(x, m):
    return (x + m - 1) // m * m


def _leaky(x, slope):
    # slope in (0,1): max(x, slope*x) == LeakyReLU(x); one VALU op vs cmp+select.
    return jnp.maximum(x, slope * x)


# ----------------------------- Pallas kernels ------------------------------ #

def _conv_kernel(p_ref, w_ref, b_ref, o_ref, *, leaky, slope):
    """Conv-as-GEMM + bias (+ LeakyReLU), no BatchNorm.  grid=(m_tiles,)."""
    acc = jnp.dot(p_ref[...], w_ref[...], preferred_element_type=jnp.float32)
    acc = acc + b_ref[...]
    if leaky:
        acc = _leaky(acc, slope)
    o_ref[...] = acc.astype(o_ref.dtype)


def _conv_bn_kernel(p_ref, w_ref, g_ref, beta_ref, o_ref,
                    *, leaky, slope, m_valid, eps):
    """Conv-as-GEMM + train-mode BatchNorm + LeakyReLU with the full M in one
    tile (grid=(1,)): single GEMM, stats in-register, single lane-dense store.
    The conv bias is dropped - batch-stat BN cancels a per-channel bias exactly.
    """
    acc = jnp.dot(p_ref[...], w_ref[...], preferred_element_type=jnp.float32)
    tm = acc.shape[0]
    if m_valid < tm:  # padded rows must not pollute the batch statistics
        row = jax.lax.broadcasted_iota(jnp.int32, (tm, 1), 0)
        masked = jnp.where(row < m_valid, acc, 0.0)
    else:
        masked = acc
    inv_m = 1.0 / float(m_valid)
    mean = jnp.sum(masked, axis=0, keepdims=True) * inv_m
    var = jnp.sum(masked * masked, axis=0, keepdims=True) * inv_m - mean * mean
    # TODO(synk): shifted-sum / Welford accumulation if M grows enough for f32
    #             cancellation in E[x^2]-E[x]^2 to matter.
    scale = jax.lax.rsqrt(var + eps) * g_ref[...]      # biased var (PyTorch train)
    y = (acc - mean) * scale + beta_ref[...]
    if leaky:
        y = _leaky(y, slope)
    o_ref[...] = y.astype(o_ref.dtype)


def _conv_bn_tiled_kernel(p_ref, w_ref, g_ref, beta_ref, o_ref,
                          acc_ref, sum_ref, sq_ref, scale_ref, shift_ref,
                          *, leaky, slope, m_valid, eps):
    """Larger-M BN path (not exercised at the test sizes).  grid=(2, m_tiles):
      phase 0: GEMM into a persistent f32 VMEM cache + masked per-channel
               sum / sum-of-squares (no HBM output writeback, out index stays 0).
      phase 1: normalize cached tiles with precomputed scale/shift and store
               (no GEMM recompute, patch blocks not re-read).
    """
    ph = pl.program_id(0)
    mi = pl.program_id(1)
    nm = pl.num_programs(1)
    tm = o_ref.shape[0]

    @pl.when(ph == 0)
    def _():
        @pl.when(mi == 0)
        def _():
            sum_ref[...] = jnp.zeros_like(sum_ref)
            sq_ref[...] = jnp.zeros_like(sq_ref)

        acc = jnp.dot(p_ref[...], w_ref[...], preferred_element_type=jnp.float32)
        acc_ref[mi] = acc                                   # cache f32 tile in VMEM
        row = mi * tm + jax.lax.broadcasted_iota(jnp.int32, (tm, 1), 0)
        masked = jnp.where(row < m_valid, acc, 0.0)
        sum_ref[...] += jnp.sum(masked, axis=0, keepdims=True)
        sq_ref[...] += jnp.sum(masked * masked, axis=0, keepdims=True)

        @pl.when(mi == nm - 1)
        def _():                                            # stats computed once
            inv_m = 1.0 / float(m_valid)
            mean = sum_ref[...] * inv_m
            var = sq_ref[...] * inv_m - mean * mean
            scale = jax.lax.rsqrt(var + eps) * g_ref[...]
            scale_ref[...] = scale
            shift_ref[...] = beta_ref[...] - mean * scale

    @pl.when(ph == 1)
    def _():
        y = acc_ref[mi] * scale_ref[...] + shift_ref[...]
        if leaky:
            y = _leaky(y, slope)
        o_ref[...] = y.astype(o_ref.dtype)


# ------------------------------- JAX glue ----------------------------------- #

def im2col_nhwc(x, kh, kw, stride, pad):
    """x: (N, H, W, C) -> patches (N*OH*OW, KH*KW*C); K ordered (ki, kj, c)."""
    N, H, W, C = x.shape
    xp = jnp.pad(x, ((0, 0), (pad, pad), (pad, pad), (0, 0)))
    OH = (H + 2 * pad - kh) // stride + 1
    OW = (W + 2 * pad - kw) // stride + 1
    cols = []
    for i in range(kh):
        for j in range(kw):
            cols.append(xp[:, i:i + stride * (OH - 1) + 1:stride,
                            j:j + stride * (OW - 1) + 1:stride, :])
    patches = jnp.stack(cols, axis=3)                   # (N, OH, OW, KH*KW, C)
    return patches.reshape(N * OH * OW, kh * kw * C), OH, OW


def _pick_tm(M, K, Cp, bn):
    """Largest 16-aligned M-tile whose working set stays inside VMEM_BUDGET."""
    per_row = 2 * K * 2 + 2 * Cp * 4 + (Cp * 4 if bn else 0)   # bf16 patches, f32 out/cache
    fixed = 2 * K * Cp * 2 + 8 * Cp * 4                        # weights + channel vectors
    tm = max(16, (VMEM_BUDGET - fixed) // max(per_row, 1))
    tm = min(tm, MAX_TM, _round_up(M, 16))
    return max(16, tm // 16 * 16)


def conv_block(x_nhwc, layer, *, kh, kw, stride, pad, bn, leaky):
    """One fused conv(+train-mode BN)(+LeakyReLU) layer.

    Input NHWC with the *real* channel count; output NHWC with Cout padded to
    128 lanes (lane-dense stores); the caller slices back to the real Cout.
    """
    w_flat = layer["w"]                                  # (K, Cp) bf16, K = kh*kw*Cin real
    N, H, W, Cin = x_nhwc.shape
    K, Cp = w_flat.shape
    assert K == kh * kw * Cin, (K, kh, kw, Cin)

    patches, OH, OW = im2col_nhwc(x_nhwc, kh, kw, stride, pad)
    patches = patches.astype(jnp.bfloat16)               # bf16 MXU operands, f32 accumulate
    M = N * OH * OW
    tm = _pick_tm(M, K, Cp, bn)
    Mp = _round_up(M, tm)
    if Mp != M:
        patches = jnp.pad(patches, ((0, Mp - M), (0, 0)))
    m_tiles = Mp // tm

    bias = layer["b"].reshape(1, Cp)
    gamma = layer["gamma"].reshape(1, Cp)
    beta = layer["beta"].reshape(1, Cp)
    cp = pltpu.CompilerParams                             # shorthand

    if not bn:
        out = pl.pallas_call(
            functools.partial(_conv_kernel, leaky=leaky, slope=NEG_SLOPE),
            out_shape=jax.ShapeDtypeStruct((Mp, Cp), jnp.float32),
            grid=(m_tiles,),
            in_specs=[
                pl.BlockSpec((tm, K), lambda i: (i, 0)),      # patches (per M tile)
                pl.BlockSpec((K, Cp), lambda i: (0, 0)),      # weights (VMEM resident)
                pl.BlockSpec((1, Cp), lambda i: (0, 0)),      # bias
            ],
            out_specs=pl.BlockSpec((tm, Cp), lambda i: (i, 0)),
            compiler_params=cp(dimension_semantics=("parallel",),
                               vmem_limit_bytes=VMEM_LIMIT),
        )(patches, w_flat, bias)
    elif m_tiles == 1:
        # Whole M fits one tile: single-pass GEMM + BN + activation.
        out = pl.pallas_call(
            functools.partial(_conv_bn_kernel, leaky=leaky, slope=NEG_SLOPE,
                              m_valid=M, eps=BN_EPS),
            out_shape=jax.ShapeDtypeStruct((Mp, Cp), jnp.float32),
            grid=(1,),
            in_specs=[
                pl.BlockSpec((tm, K), lambda i: (0, 0)),
                pl.BlockSpec((K, Cp), lambda i: (0, 0)),
                pl.BlockSpec((1, Cp), lambda i: (0, 0)),      # gamma
                pl.BlockSpec((1, Cp), lambda i: (0, 0)),      # beta
            ],
            out_specs=pl.BlockSpec((tm, Cp), lambda i: (0, 0)),
            compiler_params=cp(dimension_semantics=("arbitrary",),
                               vmem_limit_bytes=VMEM_LIMIT),
        )(patches, w_flat, gamma, beta)
    else:
        # Larger M: two-phase grid, GEMM tiles cached in VMEM (no recompute,
        # no dead HBM writeback, no patch re-read in phase 1).
        assert Mp * Cp * 4 <= VMEM_BUDGET, "TODO(synk): recompute fallback for huge M"
        out = pl.pallas_call(
            functools.partial(_conv_bn_tiled_kernel, leaky=leaky, slope=NEG_SLOPE,
                              m_valid=M, eps=BN_EPS),
            out_shape=jax.ShapeDtypeStruct((Mp, Cp), jnp.float32),
            grid=(2, m_tiles),
            in_specs=[
                # phase 1 never advances the patch block -> no full re-read
                pl.BlockSpec((tm, K), lambda ph, i: ((1 - ph) * i, 0)),
                pl.BlockSpec((K, Cp), lambda ph, i: (0, 0)),
                pl.BlockSpec((1, Cp), lambda ph, i: (0, 0)),
                pl.BlockSpec((1, Cp), lambda ph, i: (0, 0)),
            ],
            # phase 0 keeps the out index at 0 (never written) -> no dead store
            out_specs=pl.BlockSpec((tm, Cp), lambda ph, i: (ph * i, 0)),
            scratch_shapes=[
                pltpu.VMEM((m_tiles, tm, Cp), jnp.float32),   # cached f32 activations
                pltpu.VMEM((1, Cp), jnp.float32),             # per-channel sum
                pltpu.VMEM((1, Cp), jnp.float32),             # per-channel sum of squares
                pltpu.VMEM((1, Cp), jnp.float32),             # scale = gamma * inv_std
                pltpu.VMEM((1, Cp), jnp.float32),             # shift = beta - mean * scale
            ],
            compiler_params=cp(dimension_semantics=("arbitrary", "arbitrary"),
                               vmem_limit_bytes=VMEM_LIMIT),
        )(patches, w_flat, gamma, beta)

    return out[:M].reshape(N, OH, OW, Cp)


@functools.partial(jax.jit, static_argnames=("couts",))
def discriminator_forward(x_nchw, params, *, couts):
    """Mirrors Discriminator.forward (train-mode BN).  NCHW in / NCHW out."""
    x = jnp.transpose(x_nchw, (0, 2, 3, 1))               # NCHW -> NHWC once
    for li, p in enumerate(params["layers"]):
        x = conv_block(x, p, kh=4, kw=4, stride=2, pad=1, bn=(li != 0), leaky=True)
        x = x[..., :couts[li]]                            # drop lane padding -> real K next layer
    x = conv_block(x, params["final"], kh=4, kw=4, stride=1, pad=1, bn=False, leaky=False)
    x = x[..., :couts[-1]]
    return jnp.transpose(x, (0, 3, 1, 2))                 # back to NCHW


# ------------------------- deterministic parameters ------------------------- #

def init_params(key, disc_cfg):
    """Raw parameters in PyTorch layout: w (Cout, Cin, KH, KW), b (Cout,)."""
    raw = {"layers": []}
    for (cin, cout) in disc_cfg:
        key, k1, k2, k3, k4 = jax.random.split(key, 5)
        raw["layers"].append({
            "w": 0.05 * jax.random.normal(k1, (cout, cin, 4, 4), jnp.float32),
            "b": 0.05 * jax.random.normal(k2, (cout,), jnp.float32),
            "gamma": 1.0 + 0.1 * jax.random.normal(k3, (cout,), jnp.float32),
            "beta": 0.1 * jax.random.normal(k4, (cout,), jnp.float32),
        })
    cout_last = disc_cfg[-1][1]
    key, k1, k2 = jax.random.split(key, 3)
    raw["final"] = {
        "w": 0.05 * jax.random.normal(k1, (1, cout_last, 4, 4), jnp.float32),
        "b": 0.05 * jax.random.normal(k2, (1,), jnp.float32),
    }
    return raw


def _prep_conv(w, b, cout_pad, gamma=None, beta=None):
    """(Cout,Cin,KH,KW) -> lane-dense bf16 GEMM weight (KH*KW*Cin, cout_pad).

    Only Cout (the GEMM output / lane dim) is padded; the reduction dim keeps
    the real Cin so no MXU/DMA work is spent on zeros.
    """
    cout, cin, kh, kw = w.shape
    wt = jnp.transpose(w, (2, 3, 1, 0))                    # (KH, KW, Cin, Cout)
    wt = jnp.pad(wt, ((0, 0), (0, 0), (0, 0), (0, cout_pad - cout)))
    prep = {
        "w": wt.reshape(kh * kw * cin, cout_pad).astype(jnp.bfloat16),
        "b": jnp.pad(b, (0, cout_pad - cout)).astype(jnp.float32),
    }
    if gamma is None:
        prep["gamma"] = jnp.zeros((cout_pad,), jnp.float32)
        prep["beta"] = jnp.zeros((cout_pad,), jnp.float32)
    else:
        prep["gamma"] = jnp.pad(gamma, (0, cout_pad - cout))   # padded chans: gamma = 0
        prep["beta"] = jnp.pad(beta, (0, cout_pad - cout))     # padded chans: beta  = 0
    return prep


def prepare_params(raw):
    """One-time transpose/pad/cast so every layer's GEMM is bf16 and lane-dense."""
    prepared = {"layers": []}
    for lp in raw["layers"]:
        cout_pad = _round_up(lp["w"].shape[0], LANE)
        prepared["layers"].append(
            _prep_conv(lp["w"], lp["b"], cout_pad, lp["gamma"], lp["beta"]))
    fp = raw["final"]
    prepared["final"] = _prep_conv(fp["w"], fp["b"], _round_up(fp["w"].shape[0], LANE))
    return prepared


# ---------------------------------- main ------------------------------------ #

if __name__ == "__main__":
    # Synthetic config consistent with the PyTorch module:
    #   config.discriminator_layers = 3
    #   config.discriminator = [(4, 8), (8, 16), (16, 32)]
    disc_cfg = [(4, 8), (8, 16), (16, 32)]
    couts = tuple(c for (_, c) in disc_cfg) + (1,)         # real Cout per layer (static)

    key = jax.random.PRNGKey(0)
    key, xkey, pkey = jax.random.split(key, 3)
    x = jax.random.normal(xkey, (2, 4, 16, 16), jnp.float32)   # NCHW, like PyTorch
    raw = init_params(pkey, disc_cfg)
    params = prepare_params(raw)

    out = jax.block_until_ready(discriminator_forward(x, params, couts=couts))

    # spatial: 16 -> 8 -> 4 -> 2 -> final(k=4, s=1, p=1) -> 1
    assert out.shape == (2, 1, 1, 1), out.shape
    assert out.dtype == jnp.float32
    assert bool(jnp.all(jnp.isfinite(out)))
    print("KERNEL_OK")
</pallas_src>

<mosaic_0001>
module attributes {stable_mosaic.version = 11 : i64} {
  func.func @_conv_kernel(%arg0: i32, %arg1: memref<128x64xbf16, #tpu.memory_space<vmem>>, %arg2: memref<64x128xbf16, #tpu.memory_space<vmem>>, %arg3: memref<1x128xf32, #tpu.memory_space<vmem>>, %arg4: memref<128x128xf32, #tpu.memory_space<vmem>>) attributes {dimension_semantics = [#tpu.dimension_semantics<parallel>], iteration_bounds = array<i64: 1>, scalar_prefetch = 0 : i64, scratch_operands = 0 : i64, tpu.core_type = #tpu.core_type<tc>, window_params = [{transform_indices = @transform_0, window_bounds = array<i64: 128, 64>}, {pipeline_mode = #tpu.pipeline_mode<synchronous>, transform_indices = @transform_1, window_bounds = array<i64: 64, 128>}, {pipeline_mode = #tpu.pipeline_mode<synchronous>, transform_indices = @transform_2, window_bounds = array<i64: 1, 128>}, {transform_indices = @transform_3, window_bounds = array<i64: 128, 128>}]} {
    %c0 = arith.constant 0 : index
    %c0_0 = arith.constant 0 : index
    %0 = vector.load %arg1[%c0, %c0_0] : memref<128x64xbf16, #tpu.memory_space<vmem>>, vector<128x64xbf16>
    %c0_1 = arith.constant 0 : index
    %c0_2 = arith.constant 0 : index
    %1 = vector.load %arg2[%c0_1, %c0_2] : memref<64x128xbf16, #tpu.memory_space<vmem>>, vector<64x128xbf16>
    %cst = arith.constant dense<0.000000e+00> : vector<128x128xf32>
    %2 = tpu.matmul %0, %1, %cst {dimension_numbers = #tpu.dot_dimension_numbers<[1], [0], [0], [1], [0, 0, 1, 1], [], []>} : vector<128x64xbf16>, vector<64x128xbf16>, vector<128x128xf32> -> vector<128x128xf32>
    %c0_3 = arith.constant 0 : index
    %c0_4 = arith.constant 0 : index
    %3 = vector.load %arg3[%c0_3, %c0_4] : memref<1x128xf32, #tpu.memory_space<vmem>>, vector<1x128xf32>
    %4 = vector.broadcast %3 : vector<1x128xf32> to vector<128x128xf32>
    %5 = arith.addf %2, %4 : vector<128x128xf32>
    %cst_5 = arith.constant 2.000000e-01 : f32
    %6 = vector.broadcast %cst_5 : f32 to vector<128x128xf32>
    %7 = arith.mulf %6, %5 : vector<128x128xf32>
    %8 = arith.maximumf %5, %7 : vector<128x128xf32>
    %c0_6 = arith.constant 0 : index
    %c0_7 = arith.constant 0 : index
    %9 = vector.load %arg4[%c0_6, %c0_7] : memref<128x128xf32, #tpu.memory_space<vmem>>, vector<128x128xf32>
    tpu.vector_store %arg4[%c0_6, %c0_7], %8 {strides = array<i32>} : memref<128x128xf32, #tpu.memory_space<vmem>>, vector<128x128xf32>,
    return
  }
  func.func @transform_0(%arg0: i32) -> (i32, i32) {
    %c0_i32 = arith.constant 0 : i32
    %c0_i32_0 = arith.constant 0 : i32
    return %arg0, %c0_i32 : i32, i32
  }
  func.func @transform_1(%arg0: i32) -> (i32, i32) {
    %c0_i32 = arith.constant 0 : i32
    %c0_i32_0 = arith.constant 0 : i32
    %c0_i32_1 = arith.constant 0 : i32
    return %c0_i32, %c0_i32_0 : i32, i32
  }
  func.func @transform_2(%arg0: i32) -> (i32, i32) {
    %c0_i32 = arith.constant 0 : i32
    %c0_i32_0 = arith.constant 0 : i32
    %c0_i32_1 = arith.constant 0 : i32
    return %c0_i32, %c0_i32_0 : i32, i32
  }
  func.func @transform_3(%arg0: i32) -> (i32, i32) {
    %c0_i32 = arith.constant 0 : i32
    %c0_i32_0 = arith.constant 0 : i32
    return %arg0, %c0_i32 : i32, i32
  }
}

module attributes {stable_mosaic.version = 11 : i64} {
  func.func @_conv_bn_kernel(%arg0: i32, %arg1: memref<32x128xbf16, #tpu.memory_space<vmem>>, %arg2: memref<128x128xbf16, #tpu.memory_space<vmem>>, %arg3: memref<1x128xf32, #tpu.memory_space<vmem>>, %arg4: memref<1x128xf32, #tpu.memory_space<vmem>>, %arg5: memref<32x128xf32, #tpu.memory_space<vmem>>) attributes {dimension_semantics = [#tpu.dimension_semantics<arbitrary>], iteration_bounds = array<i64: 1>, scalar_prefetch = 0 : i64, scratch_operands = 0 : i64, tpu.core_type = #tpu.core_type<tc>, window_params = [{pipeline_mode = #tpu.pipeline_mode<synchronous>, transform_indices = @transform_0, window_bounds = array<i64: 32, 128>}, {pipeline_mode = #tpu.pipeline_mode<synchronous>, transform_indices = @transform_1, window_bounds = array<i64: 128, 128>}, {pipeline_mode = #tpu.pipeline_mode<synchronous>, transform_indices = @transform_2, window_bounds = array<i64: 1, 128>}, {pipeline_mode = #tpu.pipeline_mode<synchronous>, transform_indices = @transform_3, window_bounds = array<i64: 1, 128>}, {pipeline_mode = #tpu.pipeline_mode<synchronous>, transform_indices = @transform_4, window_bounds = array<i64: 32, 128>}]} {
    %c0 = arith.constant 0 : index
    %c0_0 = arith.constant 0 : index
    %0 = vector.load %arg1[%c0, %c0_0] : memref<32x128xbf16, #tpu.memory_space<vmem>>, vector<32x128xbf16>
    %c0_1 = arith.constant 0 : index
    %c0_2 = arith.constant 0 : index
    %1 = vector.load %arg2[%c0_1, %c0_2] : memref<128x128xbf16, #tpu.memory_space<vmem>>, vector<128x128xbf16>
    %cst = arith.constant dense<0.000000e+00> : vector<32x128xf32>
    %2 = tpu.matmul %0, %1, %cst {dimension_numbers = #tpu.dot_dimension_numbers<[1], [0], [0], [1], [0, 0, 1, 1], [], []>} : vector<32x128xbf16>, vector<128x128xbf16>, vector<32x128xf32> -> vector<32x128xf32>
    %cst_3 = arith.constant dense<0.000000e+00> : vector<128xf32>
    %3 = vector.multi_reduction <add>, %2, %cst_3 [0] : vector<32x128xf32> to vector<128xf32>
    %4 = vector.shape_cast %3 : vector<128xf32> to vector<1x128xf32>
    %cst_4 = arith.constant 3.125000e-02 : f32
    %5 = vector.broadcast %cst_4 : f32 to vector<1x128xf32>
    %6 = arith.mulf %4, %5 : vector<1x128xf32>
    %7 = arith.mulf %2, %2 : vector<32x128xf32>
    %cst_5 = arith.constant dense<0.000000e+00> : vector<128xf32>
    %8 = vector.multi_reduction <add>, %7, %cst_5 [0] : vector<32x128xf32> to vector<128xf32>
    %9 = vector.shape_cast %8 : vector<128xf32> to vector<1x128xf32>
    %cst_6 = arith.constant 3.125000e-02 : f32
    %10 = vector.broadcast %cst_6 : f32 to vector<1x128xf32>
    %11 = arith.mulf %9, %10 : vector<1x128xf32>
    %12 = arith.mulf %6, %6 : vector<1x128xf32>
    %13 = arith.subf %11, %12 : vector<1x128xf32>
    %cst_7 = arith.constant 9.99999974E-6 : f32
    %14 = vector.broadcast %cst_7 : f32 to vector<1x128xf32>
    %15 = arith.addf %13, %14 : vector<1x128xf32>
    %16 = math.rsqrt %15 : vector<1x128xf32>
    %c0_8 = arith.constant 0 : index
    %c0_9 = arith.constant 0 : index
    %17 = vector.load %arg3[%c0_8, %c0_9] : memref<1x128xf32, #tpu.memory_space<vmem>>, vector<1x128xf32>
    %18 = arith.mulf %16, %17 : vector<1x128xf32>
    %19 = vector.broadcast %6 : vector<1x128xf32> to vector<32x128xf32>
    %20 = arith.subf %2, %19 : vector<32x128xf32>
    %21 = vector.broadcast %18 : vector<1x128xf32> to vector<32x128xf32>
    %22 = arith.mulf %20, %21 : vector<32x128xf32>
    %c0_10 = arith.constant 0 : index
    %c0_11 = arith.constant 0 : index
    %23 = vector.load %arg4[%c0_10, %c0_11] : memref<1x128xf32, #tpu.memory_space<vmem>>, vector<1x128xf32>
    %24 = vector.broadcast %23 : vector<1x128xf32> to vector<32x128xf32>
    %25 = arith.addf %22, %24 : vector<32x128xf32>
    %cst_12 = arith.constant 2.000000e-01 : f32
    %26 = vector.broadcast %cst_12 : f32 to vector<32x128xf32>
    %27 = arith.mulf %26, %25 : vector<32x128xf32>
    %28 = arith.maximumf %25, %27 : vector<32x128xf32>
    %c0_13 = arith.constant 0 : index
    %c0_14 = arith.constant 0 : index
    %29 = vector.load %arg5[%c0_13, %c0_14] : memref<32x128xf32, #tpu.memory_space<vmem>>, vector<32x128xf32>
    tpu.vector_store %arg5[%c0_13, %c0_14], %28 {strides = array<i32>} : memref<32x128xf32, #tpu.memory_space<vmem>>, vector<32x128xf32>,
    return
  }
  func.func @transform_0(%arg0: i32) -> (i32, i32) {
    %c0_i32 = arith.constant 0 : i32
    %c0_i32_0 = arith.constant 0 : i32
    %c0_i32_1 = arith.constant 0 : i32
    return %c0_i32, %c0_i32_0 : i32, i32
  }
  func.func @transform_1(%arg0: i32) -> (i32, i32) {
    %c0_i32 = arith.constant 0 : i32
    %c0_i32_0 = arith.constant 0 : i32
    %c0_i32_1 = arith.constant 0 : i32
    return %c0_i32, %c0_i32_0 : i32, i32
  }
  func.func @transform_2(%arg0: i32) -> (i32, i32) {
    %c0_i32 = arith.constant 0 : i32
    %c0_i32_0 = arith.constant 0 : i32
    %c0_i32_1 = arith.constant 0 : i32
    return %c0_i32, %c0_i32_0 : i32, i32
  }
  func.func @transform_3(%arg0: i32) -> (i32, i32) {
    %c0_i32 = arith.constant 0 : i32
    %c0_i32_0 = arith.constant 0 : i32
    %c0_i32_1 = arith.constant 0 : i32
    return %c0_i32, %c0_i32_0 : i32, i32
  }
  func.func @transform_4(%arg0: i32) -> (i32, i32) {
    %c0_i32 = arith.constant 0 : i32
    %c0_i32_0 = arith.constant 0 : i32
    %c0_i32_1 = arith.constant 0 : i32
    return %c0_i32, %c0_i32_0 : i32, i32
  }
}

module attributes {stable_mosaic.version = 11 : i64} {
  func.func @_conv_bn_kernel(%arg0: i32, %arg1: memref<16x256xbf16, #tpu.memory_space<vmem>>, %arg2: memref<256x128xbf16, #tpu.memory_space<vmem>>, %arg3: memref<1x128xf32, #tpu.memory_space<vmem>>, %arg4: memref<1x128xf32, #tpu.memory_space<vmem>>, %arg5: memref<16x128xf32, #tpu.memory_space<vmem>>) attributes {dimension_semantics = [#tpu.dimension_semantics<arbitrary>], iteration_bounds = array<i64: 1>, scalar_prefetch = 0 : i64, scratch_operands = 0 : i64, tpu.core_type = #tpu.core_type<tc>, window_params = [{pipeline_mode = #tpu.pipeline_mode<synchronous>, transform_indices = @transform_0, window_bounds = array<i64: 16, 256>}, {pipeline_mode = #tpu.pipeline_mode<synchronous>, transform_indices = @transform_1, window_bounds = array<i64: 256, 128>}, {pipeline_mode = #tpu.pipeline_mode<synchronous>, transform_indices = @transform_2, window_bounds = array<i64: 1, 128>}, {pipeline_mode = #tpu.pipeline_mode<synchronous>, transform_indices = @transform_3, window_bounds = array<i64: 1, 128>}, {pipeline_mode = #tpu.pipeline_mode<synchronous>, transform_indices = @transform_4, window_bounds = array<i64: 16, 128>}]} {
    %c0 = arith.constant 0 : index
    %c0_0 = arith.constant 0 : index
    %0 = vector.load %arg1[%c0, %c0_0] : memref<16x256xbf16, #tpu.memory_space<vmem>>, vector<16x256xbf16>
    %c0_1 = arith.constant 0 : index
    %c0_2 = arith.constant 0 : index
    %1 = vector.load %arg2[%c0_1, %c0_2] : memref<256x128xbf16, #tpu.memory_space<vmem>>, vector<256x128xbf16>
    %cst = arith.constant dense<0.000000e+00> : vector<16x128xf32>
    %2 = tpu.matmul %0, %1, %cst {dimension_numbers = #tpu.dot_dimension_numbers<[1], [0], [0], [1], [0, 0, 1, 1], [], []>} : vector<16x256xbf16>, vector<256x128xbf16>, vector<16x128xf32> -> vector<16x128xf32>
    %3 = tpu.iota {dimensions = array<i32: 0>} : vector<16x1xi32>
    %c8_i32 = arith.constant 8 : i32
    %4 = vector.broadcast %c8_i32 : i32 to vector<16x1xi32>
    %5 = arith.cmpi slt, %3, %4 : vector<16x1xi32>
    %cst_3 = arith.constant 0.000000e+00 : f32
    %6 = vector.shape_cast %5 : vector<16x1xi1> to vector<16x1xi1>
    %7 = vector.broadcast %6 : vector<16x1xi1> to vector<16x128xi1>
    %8 = vector.broadcast %cst_3 : f32 to vector<16x128xf32>
    %9 = arith.select %7, %2, %8 : vector<16x128xi1>, vector<16x128xf32>
    %cst_4 = arith.constant dense<0.000000e+00> : vector<128xf32>
    %10 = vector.multi_reduction <add>, %9, %cst_4 [0] : vector<16x128xf32> to vector<128xf32>
    %11 = vector.shape_cast %10 : vector<128xf32> to vector<1x128xf32>
    %cst_5 = arith.constant 1.250000e-01 : f32
    %12 = vector.broadcast %cst_5 : f32 to vector<1x128xf32>
    %13 = arith.mulf %11, %12 : vector<1x128xf32>
    %14 = arith.mulf %9, %9 : vector<16x128xf32>
    %cst_6 = arith.constant dense<0.000000e+00> : vector<128xf32>
    %15 = vector.multi_reduction <add>, %14, %cst_6 [0] : vector<16x128xf32> to vector<128xf32>
    %16 = vector.shape_cast %15 : vector<128xf32> to vector<1x128xf32>
    %cst_7 = arith.constant 1.250000e-01 : f32
    %17 = vector.broadcast %cst_7 : f32 to vector<1x128xf32>
    %18 = arith.mulf %16, %17 : vector<1x128xf32>
    %19 = arith.mulf %13, %13 : vector<1x128xf32>
    %20 = arith.subf %18, %19 : vector<1x128xf32>
    %cst_8 = arith.constant 9.99999974E-6 : f32
    %21 = vector.broadcast %cst_8 : f32 to vector<1x128xf32>
    %22 = arith.addf %20, %21 : vector<1x128xf32>
    %23 = math.rsqrt %22 : vector<1x128xf32>
    %c0_9 = arith.constant 0 : index
    %c0_10 = arith.constant 0 : index
    %24 = vector.load %arg3[%c0_9, %c0_10] : memref<1x128xf32, #tpu.memory_space<vmem>>, vector<1x128xf32>
    %25 = arith.mulf %23, %24 : vector<1x128xf32>
    %26 = vector.broadcast %13 : vector<1x128xf32> to vector<16x128xf32>
    %27 = arith.subf %2, %26 : vector<16x128xf32>
    %28 = vector.broadcast %25 : vector<1x128xf32> to vector<16x128xf32>
    %29 = arith.mulf %27, %28 : vector<16x128xf32>
    %c0_11 = arith.constant 0 : index
    %c0_12 = arith.constant 0 : index
    %30 = vector.load %arg4[%c0_11, %c0_12] : memref<1x128xf32, #tpu.memory_space<vmem>>, vector<1x128xf32>
    %31 = vector.broadcast %30 : vector<1x128xf32> to vector<16x128xf32>
    %32 = arith.addf %29, %31 : vector<16x128xf32>
    %cst_13 = arith.constant 2.000000e-01 : f32
    %33 = vector.broadcast %cst_13 : f32 to vector<16x128xf32>
    %34 = arith.mulf %33, %32 : vector<16x128xf32>
    %35 = arith.maximumf %32, %34 : vector<16x128xf32>
    %c0_14 = arith.constant 0 : index
    %c0_15 = arith.constant 0 : index
    %36 = vector.load %arg5[%c0_14, %c0_15] : memref<16x128xf32, #tpu.memory_space<vmem>>, vector<16x128xf32>
    tpu.vector_store %arg5[%c0_14, %c0_15], %35 {strides = array<i32>} : memref<16x128xf32, #tpu.memory_space<vmem>>, vector<16x128xf32>,
    return
  }
  func.func @transform_0(%arg0: i32) -> (i32, i32) {
    %c0_i32 = arith.constant 0 : i32
    %c0_i32_0 = arith.constant 0 : i32
    %c0_i32_1 = arith.constant 0 : i32
    return %c0_i32, %c0_i32_0 : i32, i32
  }
  func.func @transform_1(%arg0: i32) -> (i32, i32) {
    %c0_i32 = arith.constant 0 : i32
    %c0_i32_0 = arith.constant 0 : i32
    %c0_i32_1 = arith.constant 0 : i32
    return %c0_i32, %c0_i32_0 : i32, i32
  }
  func.func @transform_2(%arg0: i32) -> (i32, i32) {
    %c0_i32 = arith.constant 0 : i32
    %c0_i32_0 = arith.constant 0 : i32
    %c0_i32_1 = arith.constant 0 : i32
    return %c0_i32, %c0_i32_0 : i32, i32
  }
  func.func @transform_3(%arg0: i32) -> (i32, i32) {
    %c0_i32 = arith.constant 0 : i32
    %c0_i32_0 = arith.constant 0 : i32
    %c0_i32_1 = arith.constant 0 : i32
    return %c0_i32, %c0_i32_0 : i32, i32
  }
  func.func @transform_4(%arg0: i32) -> (i32, i32) {
    %c0_i32 = arith.constant 0 : i32
    %c0_i32_0 = arith.constant 0 : i32
    %c0_i32_1 = arith.constant 0 : i32
    return %c0_i32, %c0_i32_0 : i32, i32
  }
}

module attributes {stable_mosaic.version = 11 : i64} {
  func.func @_conv_kernel(%arg0: i32, %arg1: memref<16x512xbf16, #tpu.memory_space<vmem>>, %arg2: memref<512x128xbf16, #tpu.memory_space<vmem>>, %arg3: memref<1x128xf32, #tpu.memory_space<vmem>>, %arg4: memref<16x128xf32, #tpu.memory_space<vmem>>) attributes {dimension_semantics = [#tpu.dimension_semantics<parallel>], iteration_bounds = array<i64: 1>, scalar_prefetch = 0 : i64, scratch_operands = 0 : i64, tpu.core_type = #tpu.core_type<tc>, window_params = [{transform_indices = @transform_0, window_bounds = array<i64: 16, 512>}, {pipeline_mode = #tpu.pipeline_mode<synchronous>, transform_indices = @transform_1, window_bounds = array<i64: 512, 128>}, {pipeline_mode = #tpu.pipeline_mode<synchronous>, transform_indices = @transform_2, window_bounds = array<i64: 1, 128>}, {transform_indices = @transform_3, window_bounds = array<i64: 16, 128>}]} {
    %c0 = arith.constant 0 : index
    %c0_0 = arith.constant 0 : index
    %0 = vector.load %arg1[%c0, %c0_0] : memref<16x512xbf16, #tpu.memory_space<vmem>>, vector<16x512xbf16>
    %c0_1 = arith.constant 0 : index
    %c0_2 = arith.constant 0 : index
    %1 = vector.load %arg2[%c0_1, %c0_2] : memref<512x128xbf16, #tpu.memory_space<vmem>>, vector<512x128xbf16>
    %cst = arith.constant dense<0.000000e+00> : vector<16x128xf32>
    %2 = tpu.matmul %0, %1, %cst {dimension_numbers = #tpu.dot_dimension_numbers<[1], [0], [0], [1], [0, 0, 1, 1], [], []>} : vector<16x512xbf16>, vector<512x128xbf16>, vector<16x128xf32> -> vector<16x128xf32>
    %c0_3 = arith.constant 0 : index
    %c0_4 = arith.constant 0 : index
    %3 = vector.load %arg3[%c0_3, %c0_4] : memref<1x128xf32, #tpu.memory_space<vmem>>, vector<1x128xf32>
    %4 = vector.broadcast %3 : vector<1x128xf32> to vector<16x128xf32>
    %5 = arith.addf %2, %4 : vector<16x128xf32>
    %c0_5 = arith.constant 0 : index
    %c0_6 = arith.constant 0 : index
    %6 = vector.load %arg4[%c0_5, %c0_6] : memref<16x128xf32, #tpu.memory_space<vmem>>, vector<16x128xf32>
    tpu.vector_store %arg4[%c0_5, %c0_6], %5 {strides = array<i32>} : memref<16x128xf32, #tpu.memory_space<vmem>>, vector<16x128xf32>,
    return
  }
  func.func @transform_0(%arg0: i32) -> (i32, i32) {
    %c0_i32 = arith.constant 0 : i32
    %c0_i32_0 = arith.constant 0 : i32
    return %arg0, %c0_i32 : i32, i32
  }
  func.func @transform_1(%arg0: i32) -> (i32, i32) {
    %c0_i32 = arith.constant 0 : i32
    %c0_i32_0 = arith.constant 0 : i32
    %c0_i32_1 = arith.constant 0 : i32
    return %c0_i32, %c0_i32_0 : i32, i32
  }
  func.func @transform_2(%arg0: i32) -> (i32, i32) {
    %c0_i32 = arith.constant 0 : i32
    %c0_i32_0 = arith.constant 0 : i32
    %c0_i32_1 = arith.constant 0 : i32
    return %c0_i32, %c0_i32_0 : i32, i32
  }
  func.func @transform_3(%arg0: i32) -> (i32, i32) {
    %c0_i32 = arith.constant 0 : i32
    %c0_i32_0 = arith.constant 0 : i32
    return %arg0, %c0_i32 : i32, i32
  }
}

</mosaic_0001>

<bundles_post_ra>
// kernel: discriminator_forward.4
= control target key start
LH: loop header
LB: loop body
LE: loop exit
PB: predicated region body
PF: predicated region fallthrough
CT: control target
= control target key end

     0   :  { %vm110_vm0 = vcmask 523264   ;;  %s476_s1 = inlined_call_operand.vmem [shape: bf16[64,128], index: 1, kind: input, shape index: {}]   ;;  %s477_s0 = inlined_call_operand.vmem [shape: bf16[128,64], index: 0, kind: input, shape index: {}]   ;;  %s478_s2 = inlined_call_operand.vmem [shape: f32[1,128], index: 2, kind: input, shape index: {}]   ;;  %s479_s3 = inlined_call_operand.vmem [shape: f32[128,128], index: 3, kind: output, shape index: {}]  }
   0x1   :  { %v349_v0 = vld [vmem:[%s476_s1] sm:$0xff]   ;;  %v350_v1 = vld [vmem:[%s476_s1 + $0x8] sm:$0xff]   ;;  %v351_v2 = vld [vmem:[%s476_s1 + $0x10] sm:$0xff]  }
   0x2   :  { %317 = vmatprep.subr.bf16.mxu0 %v349_v0  ;;  %341 = vmatprep.subr.bf16.mxu1 %v349_v0  ;;  %v353_v3 = vld [vmem:[%s477_s0] sm:$0xff]   ;;  %v352_v5 = vld [vmem:[%s476_s1 + $0x18] sm:$0xff]   ;;  %v355_v6 = vld [vmem:[%s477_s0 + $0x8] sm:$0xff]  }
   0x3   :  { %318 = vmatpush3.bf16.msra.mxu0 %v349_v0  ;;  %345 = vmatpush3.bf16.msra.mxu1 %v349_v0  ;;  %v354_v4 = vld [vmem:[%s477_s0 + $0x20] sm:$0xff]   ;;  %v356_v7 = vld [vmem:[%s477_s0 + $0x28] sm:$0xff]   ;;  %v357_v8 = vld [vmem:[%s477_s0 + $0x10] sm:$0xff]  }
   0x4   :  { %319 = vmatprep.subr.bf16.mxu0 %v350_v1  ;;  %342 = vmatprep.subr.bf16.mxu1 %v350_v1  ;;  %v358_v9 = vld [vmem:[%s477_s0 + $0x30] sm:$0xff]   ;;  %v359_v10 = vld [vmem:[%s477_s0 + $0x18] sm:$0xff]   ;;  %v284_v12 = vld [vmem:[%s478_s2] ss:$0 sm:$0xff] }
   0x5   :  { %325 = vmatprep.mubr.msk.bf16.mxu0 %vm110_vm0, %v353_v3  ;;  %333 = vmatprep.mubr.msk.bf16.mxu1 %vm110_vm0, %v354_v4  ;;  %v360_v11 = vld [vmem:[%s477_s0 + $0x38] sm:$0xff]  }
   0x7   :  { %320 = vmatpush3.bf16.msra.mxu0 %v350_v1  ;;  %346 = vmatpush3.bf16.msra.mxu1 %v350_v1 }
   0x8   :  { %321 = vmatprep.subr.bf16.mxu0 %v351_v2  ;;  %343 = vmatprep.subr.bf16.mxu1 %v351_v2 }
   0xb   :  { %322 = vmatpush3.bf16.msra.mxu0 %v351_v2  ;;  %347 = vmatpush3.bf16.msra.mxu1 %v351_v2 }
   0xc   :  { %323 = vmatprep.subr.bf16.mxu0 %v352_v5  ;;  %344 = vmatprep.subr.bf16.mxu1 %v352_v5 }
   0xf   :  { %324 = vmatpush3.bf16.msra.mxu0 %v352_v5  ;;  %348 = vmatpush3.bf16.msra.mxu1 %v352_v5 }
  0x12   :  { %326 = vmatmul.mubr.msk.bf16.vlgmr.msra.gmra.mrb[0].mxu0 %vm110_vm0, %v355_v6  ;;  %334 = vmatmul.mubr.msk.bf16.vlgmr.msra.gmra.mrb[0].mxu1 %vm110_vm0, %v356_v7 }
  0x13   :  { %329 = vmatprep.mubr.msk.bf16.mxu0 %vm110_vm0, %v357_v8  ;;  %337 = vmatprep.mubr.msk.bf16.mxu1 %vm110_vm0, %v358_v9 }
  0x1a   :  { %330 = vmatmul.mubr.msk.bf16.gmra.mrb[4].mxu0 %vm110_vm0, %v359_v10  ;;  %338 = vmatmul.mubr.msk.bf16.gmra.mrb[4].mxu1 %vm110_vm0, %v360_v11 }
  0xe5   :  { %v327_v13 = vpop.f32.mrb[0].mxu0  ;;  %v335_v14 = vpop.f32.mrb[0].mxu1 }
  0xe6   :  { %v178_v15 = vadd.f32 %v327_v13, %v284_v12  ;;  %v210_v16 = vadd.f32 %v335_v14, %v284_v12  ;;  %v169_v17 = vpop.f32.mrb[1].mxu0  ;;  %v201_v18 = vpop.f32.mrb[1].mxu1 }
  0xe7   :  { %v170_v19 = vadd.f32 %v284_v12, %v169_v17  ;;  %v202_v20 = vadd.f32 %v284_v12, %v201_v18  ;;  %v328_v21 = vpop.f32.mrb[2].mxu0  ;;  %v336_v22 = vpop.f32.mrb[2].mxu1 }
  0xe8   :  { %v234_v23 = vmul.f32 0.2, %v178_v15  ;;  %v242_v24 = vmul.f32 0.2, %v210_v16  ;;  %v181_v25 = vadd.f32 %v328_v21, %v284_v12  ;;  %v213_v26 = vadd.f32 %v336_v22, %v284_v12  ;;  %v172_v27 = vpop.f32.mrb[3].mxu0  ;;  %v204_v28 = vpop.f32.mrb[3].mxu1 }
  0xe9   :  { %v232_v29 = vmul.f32 0.2, %v170_v19  ;;  %v240_v30 = vmul.f32 0.2, %v202_v20  ;;  %v173_v31 = vadd.f32 %v284_v12, %v172_v27  ;;  %v205_v32 = vadd.f32 %v284_v12, %v204_v28 }
  0xea   :  { %v250_v33 = vmax.f32 %v178_v15, %v234_v23  ;;  %v258_v34 = vmax.f32 %v210_v16, %v242_v24  ;;  %v235_v35 = vmul.f32 0.2, %v181_v25  ;;  %v243_v36 = vmul.f32 0.2, %v213_v26 }
  0xeb   :  { %v248_v37 = vmax.f32 %v170_v19, %v232_v29  ;;  %v256_v38 = vmax.f32 %v202_v20, %v240_v30  ;;  %v233_v39 = vmul.f32 0.2, %v173_v31  ;;  %v241_v40 = vmul.f32 0.2, %v205_v32 }
  0xec   :  { %266 = vst [vmem:[%s479_s3 + $0x10] sm:$0xff] %v250_v33  ;;  %274 = vst [vmem:[%s479_s3 + $0x50] sm:$0xff] %v258_v34  ;;  %v251_v41 = vmax.f32 %v181_v25, %v235_v35  ;;  %v259_v42 = vmax.f32 %v213_v26, %v243_v36 }
  0xed   :  { %264 = vst [vmem:[%s479_s3] sm:$0xff] %v248_v37  ;;  %272 = vst [vmem:[%s479_s3 + $0x40] sm:$0xff] %v256_v38  ;;  %v249_v43 = vmax.f32 %v173_v31, %v233_v39  ;;  %v257_v44 = vmax.f32 %v205_v32, %v241_v40  ;;  %v331_v45 = vpop.f32.mrb[4].mxu0  ;;  %v339_v46 = vpop.f32.mrb[4].mxu1 }
  0xee   :  { %267 = vst [vmem:[%s479_s3 + $0x18] sm:$0xff] %v251_v41  ;;  %275 = vst [vmem:[%s479_s3 + $0x58] sm:$0xff] %v259_v42  ;;  %v194_v47 = vadd.f32 %v331_v45, %v284_v12  ;;  %v226_v48 = vadd.f32 %v339_v46, %v284_v12  ;;  %v185_v49 = vpop.f32.mrb[5].mxu0  ;;  %v217_v50 = vpop.f32.mrb[5].mxu1 }
  0xef   :  { %265 = vst [vmem:[%s479_s3 + $0x8] sm:$0xff] %v249_v43  ;;  %273 = vst [vmem:[%s479_s3 + $0x48] sm:$0xff] %v257_v44  ;;  %v186_v51 = vadd.f32 %v284_v12, %v185_v49  ;;  %v218_v52 = vadd.f32 %v284_v12, %v217_v50  ;;  %v332_v53 = vpop.f32.mrb[6].mxu0  ;;  %v340_v54 = vpop.f32.mrb[6].mxu1 }
  0xf0   :  { %v238_v55 = vmul.f32 0.2, %v194_v47  ;;  %v246_v56 = vmul.f32 0.2, %v226_v48  ;;  %v197_v57 = vadd.f32 %v332_v53, %v284_v12  ;;  %v229_v58 = vadd.f32 %v340_v54, %v284_v12  ;;  %v188_v59 = vpop.f32.mrb[7].mxu0  ;;  %v220_v60 = vpop.f32.mrb[7].mxu1 }
  0xf1   :  { %v236_v61 = vmul.f32 0.2, %v186_v51  ;;  %v244_v62 = vmul.f32 0.2, %v218_v52  ;;  %v189_v63 = vadd.f32 %v284_v12, %v188_v59  ;;  %v221_v0 = vadd.f32 %v284_v12, %v220_v60 }
  0xf2   :  { %v254_v1 = vmax.f32 %v194_v47, %v238_v55  ;;  %v262_v2 = vmax.f32 %v226_v48, %v246_v56  ;;  %v239_v3 = vmul.f32 0.2, %v197_v57  ;;  %v247_v4 = vmul.f32 0.2, %v229_v58 }
  0xf3   :  { %v252_v5 = vmax.f32 %v186_v51, %v236_v61  ;;  %v260_v6 = vmax.f32 %v218_v52, %v244_v62  ;;  %v237_v7 = vmul.f32 0.2, %v189_v63  ;;  %v245_v8 = vmul.f32 0.2, %v221_v0 }
  0xf4   :  { %270 = vst [vmem:[%s479_s3 + $0x30] sm:$0xff] %v254_v1  ;;  %278 = vst [vmem:[%s479_s3 + $0x70] sm:$0xff] %v262_v2  ;;  %v255_v9 = vmax.f32 %v197_v57, %v239_v3  ;;  %v263_v10 = vmax.f32 %v229_v58, %v247_v4 }
  0xf5   :  { %268 = vst [vmem:[%s479_s3 + $0x20] sm:$0xff] %v252_v5  ;;  %276 = vst [vmem:[%s479_s3 + $0x60] sm:$0xff] %v260_v6  ;;  %v253_v11 = vmax.f32 %v189_v63, %v237_v7  ;;  %v261_v12 = vmax.f32 %v221_v0, %v245_v8 }
  0xf6   :  { %271 = vst [vmem:[%s479_s3 + $0x38] sm:$0xff] %v255_v9  ;;  %279 = vst [vmem:[%s479_s3 + $0x78] sm:$0xff] %v263_v10 }
  0xf7   :  { %269 = vst [vmem:[%s479_s3 + $0x28] sm:$0xff] %v253_v11  ;;  %277 = vst [vmem:[%s479_s3 + $0x68] sm:$0xff] %v261_v12 }

// kernel: discriminator_forward.5
= control target key start
LH: loop header
LB: loop body
LE: loop exit
PB: predicated region body
PF: predicated region fallthrough
CT: control target
= control target key end

     0   :  { %v181_v45 = vlaneseq  ;;  %s342_s1 = inlined_call_operand.vmem [shape: bf16[128,128], index: 1, kind: input, shape index: {}]   ;;  %s343_s0 = inlined_call_operand.vmem [shape: bf16[32,128], index: 0, kind: input, shape index: {}]   ;;  %s344_s2 = inlined_call_operand.vmem [shape: f32[1,128], index: 2, kind: input, shape index: {}]   ;;  %s345_s3 = inlined_call_operand.vmem [shape: f32[1,128], index: 3, kind: input, shape index: {}]   ;;  %s346_s4 = inlined_call_operand.vmem [shape: f32[32,128], index: 4, kind: output, shape index: {}]  }
   0x1   :  { %v257_v0 = vld [vmem:[%s342_s1] sm:$0xff]   ;;  %v258_v1 = vld [vmem:[%s342_s1 + $0x8] sm:$0xff]   ;;  %v259_v2 = vld [vmem:[%s342_s1 + $0x10] sm:$0xff]  }
   0x2   :  { %237 = vmatprep.subr.bf16.mxu0 %v257_v0  ;;  %v260_v3 = vld [vmem:[%s342_s1 + $0x18] sm:$0xff]   ;;  %v265_v4 = vld [vmem:[%s343_s0] sm:$0xff]   ;;  %v262_v6 = vld [vmem:[%s342_s1 + $0x28] sm:$0xff]   ;;  %v182_v46 = vshrl.u32 %v181_v45, 7 }
   0x3   :  { %238 = vmatpush3.bf16.msra.mxu0 %v257_v0  ;;  %253 = vmatprep.mubr.bf16.mxu0 %v265_v4  ;;  %v261_v5 = vld [vmem:[%s342_s1 + $0x20] sm:$0xff]   ;;  %v263_v7 = vld [vmem:[%s342_s1 + $0x30] sm:$0xff]   ;;  %v264_v8 = vld [vmem:[%s342_s1 + $0x38] sm:$0xff]  }
   0x4   :  { %239 = vmatprep.subr.bf16.mxu0 %v258_v1  ;;  %v266_v9 = vld [vmem:[%s343_s0 + $0x8] sm:$0xff]   ;;  %v175_v47 = vld [vmem:[%s344_s2] sm:$0x1]  ;;  %v183_v48 = vsub.s32 0, %v182_v46 }
   0x5   :  { %v226_v52 = vld [vmem:[%s345_s3] ss:$0 sm:$0xff] }
   0x7   :  { %240 = vmatpush3.bf16.msra.mxu0 %v258_v1 }
   0x8   :  { %241 = vmatprep.subr.bf16.mxu0 %v259_v2 }
   0xb   :  { %242 = vmatpush3.bf16.msra.mxu0 %v259_v2 }
   0xc   :  { %243 = vmatprep.subr.bf16.mxu0 %v260_v3 }
   0xf   :  { %244 = vmatpush3.bf16.msra.mxu0 %v260_v3 }
  0x10   :  { %245 = vmatprep.subr.bf16.mxu0 %v261_v5 }
  0x13   :  { %246 = vmatpush3.bf16.msra.mxu0 %v261_v5 }
  0x14   :  { %247 = vmatprep.subr.bf16.mxu0 %v262_v6 }
  0x17   :  { %248 = vmatpush3.bf16.msra.mxu0 %v262_v6 }
  0x18   :  { %249 = vmatprep.subr.bf16.mxu0 %v263_v7 }
  0x1b   :  { %250 = vmatpush3.bf16.msra.mxu0 %v263_v7 }
  0x1c   :  { %251 = vmatprep.subr.bf16.mxu0 %v264_v8 }
  0x1f   :  { %252 = vmatpush3.bf16.msra.mxu0 %v264_v8 }
  0x22   :  { %254 = vmatmul.mubr.bf16.vlgmr.msra.gmra.mrb[0].mxu0 %v266_v9 }
  0xf5   :  { %v255_v10 = vpop.f32.mrb[0].mxu0 }
  0xf6   :  { %v132_v11 = vpop.f32.mrb[1].mxu0  ;;  %v159_v17 = vmul.f32 %v255_v10, %v255_v10 }
  0xf7   :  { %v256_v12 = vpop.f32.mrb[2].mxu0  ;;  %v157_v14 = vmul.f32 %v132_v11, %v132_v11 }
  0xf8   :  { %v135_v13 = vpop.f32.mrb[3].mxu0  ;;  %v160_v20 = vmul.f32 %v256_v12, %v256_v12 }
  0xf9   :  { %v147_v15 = vadd.f32 %v135_v13, %v132_v11  ;;  %v158_v16 = vmul.f32 %v135_v13, %v135_v13 }
  0xfb   :  { %v148_v18 = vadd.f32 %v255_v10, %v147_v15  ;;  %v161_v19 = vadd.f32 %v158_v16, %v157_v14 }
  0xfd   :  { %v149_v21 = vadd.f32 %v256_v12, %v148_v18  ;;  %v162_v22 = vadd.f32 %v161_v19, %v159_v17 }
  0xff   :  { %v150_v23 = vrot.slane %v149_v21, 4  ;;  %v163_v24 = vadd.f32 %v162_v22, %v160_v20 }
 0x101   :  { %v151_v25 = vadd.f32 %v150_v23, %v149_v21  ;;  %v164_v26 = vrot.slane %v163_v24, 4 }
 0x103   :  { %v152_v27 = vrot.slane %v151_v25, 2  ;;  %v165_v28 = vadd.f32 %v164_v26, %v163_v24 }
 0x105   :  { %v153_v29 = vadd.f32 %v152_v27, %v151_v25  ;;  %v166_v30 = vrot.slane %v165_v28, 2 }
 0x107   :  { %v154_v31 = vrot.slane %v153_v29, 1  ;;  %v167_v32 = vadd.f32 %v166_v30, %v165_v28 }
 0x109   :  { %v155_v33 = vadd.f32 %v154_v31, %v153_v29  ;;  %v168_v34 = vrot.slane %v167_v32, 1 }
 0x10b   :  { %v156_v35 = vmul.f32 0.03125, %v155_v33  ;;  %v169_v36 = vadd.f32 %v168_v34, %v167_v32 }
 0x10d   :  { %v170_v37 = vmul.f32 0.03125, %v169_v36  ;;  %v171_v38 = vmul.f32 %v156_v35, %v156_v35  ;;  %v177_v39 = vsub.f32 %v132_v11, %v156_v35  ;;  %v178_v40 = vsub.f32 %v135_v13, %v156_v35 }
 0x10e   :  { %v179_v41 = vsub.f32 %v255_v10, %v156_v35  ;;  %v180_v42 = vsub.f32 %v256_v12, %v156_v35 }
 0x10f   :  { %v172_v43 = vsub.f32 %v170_v37, %v171_v38 }
 0x111   :  { %v173_v44 = vadd.f32 1e-05, %v172_v43 }
 0x113   :  { %267 = vrsqrt.f32 %v173_v44 }
 0x11d   :  { %v268_v49 = vpop.eup %267 }
 0x11e   :  { %v176_v50 = vmul.f32 %v268_v49, %v175_v47 }
 0x120   :  { %v184_v51 = vrot.slane %v176_v50, %v183_v48 }
 0x122   :  { %v185_v53 = vmul.f32 %v184_v51, %v177_v39  ;;  %v186_v54 = vmul.f32 %v184_v51, %v178_v40  ;;  %v187_v55 = vmul.f32 %v184_v51, %v179_v41  ;;  %v188_v56 = vmul.f32 %v184_v51, %v180_v42 }
 0x124   :  { %v196_v57 = vadd.f32 %v226_v52, %v185_v53  ;;  %v197_v58 = vadd.f32 %v226_v52, %v186_v54  ;;  %v198_v59 = vadd.f32 %v226_v52, %v187_v55  ;;  %v199_v60 = vadd.f32 %v226_v52, %v188_v56 }
 0x126   :  { %v200_v61 = vmul.f32 0.2, %v196_v57  ;;  %v201_v62 = vmul.f32 0.2, %v197_v58  ;;  %v202_v63 = vmul.f32 0.2, %v198_v59 }
 0x127   :  { %v203_v0 = vmul.f32 0.2, %v199_v60 }
 0x128   :  { %v204_v1 = vmax.f32 %v196_v57, %v200_v61  ;;  %v205_v2 = vmax.f32 %v197_v58, %v201_v62  ;;  %v206_v3 = vmax.f32 %v198_v59, %v202_v63 }
 0x129   :  { %v207_v4 = vmax.f32 %v199_v60, %v203_v0 }
 0x12a   :  { %208 = vst [vmem:[%s346_s4] sm:$0xff] %v204_v1  ;;  %209 = vst [vmem:[%s346_s4 + $0x8] sm:$0xff] %v205_v2 }
 0x12b   :  { %210 = vst [vmem:[%s346_s4 + $0x10] sm:$0xff] %v206_v3  ;;  %211 = vst [vmem:[%s346_s4 + $0x18] sm:$0xff] %v207_v4 }

// kernel: discriminator_forward.6
= control target key start
LH: loop header
LB: loop body
LE: loop exit
PB: predicated region body
PF: predicated region fallthrough
CT: control target
= control target key end

     0   :  { %v236_v43 = vlaneseq  ;;  %s414_s1 = inlined_call_operand.vmem [shape: bf16[256,128], index: 1, kind: input, shape index: {}]   ;;  %s415_s0 = inlined_call_operand.vmem [shape: bf16[16,256], index: 0, kind: input, shape index: {}]   ;;  %s416_s2 = inlined_call_operand.vmem [shape: f32[1,128], index: 2, kind: input, shape index: {}]   ;;  %s417_s3 = inlined_call_operand.vmem [shape: f32[1,128], index: 3, kind: input, shape index: {}]   ;;  %s418_s4 = inlined_call_operand.vmem [shape: f32[16,128], index: 4, kind: output, shape index: {}]  }
   0x1   :  { %v302_v0 = vld [vmem:[%s414_s1 + $0x40] sm:$0xff]   ;;  %v304_v2 = vld [vmem:[%s414_s1 + $0x48] sm:$0xff]   ;;  %v306_v4 = vld [vmem:[%s414_s1 + $0x50] sm:$0xff]  }
   0x2   :  { %v303_v1 = vld [vmem:[%s414_s1] sm:$0xff]   ;;  %280 = vmatprep.subr.bf16.mxu0 %v302_v0  ;;  %v305_v3 = vld [vmem:[%s414_s1 + $0x8] sm:$0xff]   ;;  %v307_v5 = vld [vmem:[%s414_s1 + $0x10] sm:$0xff]   ;;  %v237_v44 = vshrl.u32 %v236_v43, 7 }
   0x3   :  { %281 = vmatpush3.bf16.msra.mxu0 %v303_v1  ;;  %v308_v6 = vld [vmem:[%s414_s1 + $0x58] sm:$0xff]   ;;  %v310_v8 = vld [vmem:[%s414_s1 + $0x60] sm:$0xff]   ;;  %v312_v10 = vld [vmem:[%s414_s1 + $0x68] sm:$0xff]  }
   0x4   :  { %282 = vmatprep.subr.bf16.mxu0 %v304_v2  ;;  %v309_v7 = vld [vmem:[%s414_s1 + $0x18] sm:$0xff]   ;;  %v311_v9 = vld [vmem:[%s414_s1 + $0x20] sm:$0xff]   ;;  %v313_v12 = vld [vmem:[%s414_s1 + $0x28] sm:$0xff]   ;;  %v238_v46 = vsub.s32 0, %v237_v44 }
   0x5   :  { %v320_v11 = vld [vmem:[%s415_s0 + $0x4] ss:$8 sps:$4 sm:$0xff]   ;;  %v314_v13 = vld [vmem:[%s414_s1 + $0x70] sm:$0xff]   ;;  %v316_v15 = vld [vmem:[%s414_s1 + $0x78] sm:$0xff]  }
   0x6   :  { %190 = vmatprep.mubr.bf16.mxu0 %v320_v11  ;;  %v315_v14 = vld [vmem:[%s414_s1 + $0x30] sm:$0xff]   ;;  %v317_v16 = vld [vmem:[%s414_s1 + $0x38] sm:$0xff]   ;;  %v318_v17 = vld [vmem:[%s415_s0] ss:$8 sps:$4 sm:$0xff]  }
   0x7   :  { %283 = vmatpush3.bf16.msra.mxu0 %v305_v3  ;;  %v232_v45 = vld [vmem:[%s416_s2] sm:$0x1] }
   0x8   :  { %284 = vmatprep.subr.bf16.mxu0 %v306_v4  ;;  %v279_v51 = vld [vmem:[%s417_s3] ss:$0 sm:$0xff] }
   0xb   :  { %285 = vmatpush3.bf16.msra.mxu0 %v307_v5 }
   0xc   :  { %286 = vmatprep.subr.bf16.mxu0 %v308_v6 }
   0xf   :  { %287 = vmatpush3.bf16.msra.mxu0 %v309_v7 }
  0x10   :  { %288 = vmatprep.subr.bf16.mxu0 %v310_v8 }
  0x13   :  { %289 = vmatpush3.bf16.msra.mxu0 %v311_v9 }
  0x14   :  { %290 = vmatprep.subr.bf16.mxu0 %v312_v10 }
  0x17   :  { %291 = vmatpush3.bf16.msra.mxu0 %v313_v12 }
  0x18   :  { %292 = vmatprep.subr.bf16.mxu0 %v314_v13 }
  0x1b   :  { %293 = vmatpush3.bf16.msra.mxu0 %v315_v14 }
  0x1c   :  { %294 = vmatprep.subr.bf16.mxu0 %v316_v15 }
  0x1f   :  { %295 = vmatpush3.bf16.msra.mxu0 %v317_v16 }
  0x22   :  { %191 = vmatmul.mubr.bf16.vlgmr.msra.gmra.mrb[0].mxu0 %v318_v17 }
  0xf5   :  { %v296_v18 = vpop.f32.mrb[0].mxu0 }
  0xf6   :  { %v297_v19 = vpop.f32.mrb[1].mxu0 }
  0xf7   :  { %v298_v20 = vadd.f32 %v297_v19, %v296_v18  ;;  %v299_v21 = vpop.f32.mrb[2].mxu0 }
  0xf8   :  { %v300_v22 = vpop.f32.mrb[3].mxu0 }
  0xf9   :  { %v211_v23 = vrot.slane %v298_v20, 4  ;;  %v218_v24 = vmul.f32 %v298_v20, %v298_v20  ;;  %v301_v25 = vadd.f32 %v300_v22, %v299_v21 }
  0xfb   :  { %v212_v26 = vadd.f32 %v298_v20, %v211_v23  ;;  %v221_v27 = vrot.slane %v218_v24, 4 }
  0xfd   :  { %v213_v28 = vrot.slane %v212_v26, 2  ;;  %v222_v29 = vadd.f32 %v221_v27, %v218_v24 }
  0xff   :  { %v223_v30 = vrot.slane %v222_v29, 2  ;;  %v214_v31 = vadd.f32 %v213_v28, %v212_v26 }
 0x101   :  { %v224_v32 = vadd.f32 %v223_v30, %v222_v29  ;;  %v215_v33 = vrot.slane %v214_v31, 1 }
 0x103   :  { %v225_v34 = vrot.slane %v224_v32, 1  ;;  %v216_v35 = vadd.f32 %v215_v33, %v214_v31 }
 0x105   :  { %v226_v36 = vadd.f32 %v225_v34, %v224_v32  ;;  %v217_v37 = vmul.f32 0.125, %v216_v35 }
 0x107   :  { %v227_v38 = vmul.f32 0.125, %v226_v36  ;;  %v228_v39 = vmul.f32 %v217_v37, %v217_v37  ;;  %v235_v40 = vsub.f32 %v301_v25, %v217_v37  ;;  %v234_v49 = vsub.f32 %v298_v20, %v217_v37 }
 0x109   :  { %v229_v41 = vsub.f32 %v227_v38, %v228_v39 }
 0x10b   :  { %v230_v42 = vadd.f32 1e-05, %v229_v41 }
 0x10d   :  { %321 = vrsqrt.f32 %v230_v42 }
 0x117   :  { %v322_v47 = vpop.eup %321 }
 0x118   :  { %v233_v48 = vmul.f32 %v322_v47, %v232_v45 }
 0x11a   :  { %v239_v50 = vrot.slane %v233_v48, %v238_v46 }
 0x11c   :  { %v240_v52 = vmul.f32 %v239_v50, %v234_v49  ;;  %v241_v53 = vmul.f32 %v239_v50, %v235_v40 }
 0x11e   :  { %v249_v54 = vadd.f32 %v279_v51, %v240_v52  ;;  %v250_v55 = vadd.f32 %v279_v51, %v241_v53 }
 0x120   :  { %v251_v56 = vmul.f32 0.2, %v249_v54  ;;  %v252_v57 = vmul.f32 0.2, %v250_v55 }
 0x122   :  { %v253_v58 = vmax.f32 %v249_v54, %v251_v56  ;;  %v254_v59 = vmax.f32 %v250_v55, %v252_v57 }
 0x124   :  { %255 = vst [vmem:[%s418_s4] sm:$0xff] %v253_v58  ;;  %256 = vst [vmem:[%s418_s4 + $0x8] sm:$0xff] %v254_v59 }

// kernel: discriminator_forward.7
= control target key start
LH: loop header
LB: loop body
LE: loop exit
PB: predicated region body
PF: predicated region fallthrough
CT: control target
= control target key end

     0   :  { %s646_s1 = inlined_call_operand.vmem [shape: bf16[512,128], index: 1, kind: input, shape index: {}]   ;;  %s647_s0 = inlined_call_operand.vmem [shape: bf16[16,512], index: 0, kind: input, shape index: {}]   ;;  %s648_s2 = inlined_call_operand.vmem [shape: f32[1,128], index: 2, kind: input, shape index: {}]   ;;  %s649_s3 = inlined_call_operand.vmem [shape: f32[16,128], index: 3, kind: output, shape index: {}]  }
   0x1   :  { %v471_v0 = vld [vmem:[%s646_s1 + $0x40] sm:$0xff]   ;;  %v475_v4 = vld [vmem:[%s646_s1 + $0x48] sm:$0xff]   ;;  %v479_v8 = vld [vmem:[%s646_s1 + $0x50] sm:$0xff]  }
   0x2   :  { %v472_v1 = vld [vmem:[%s646_s1 + $0xc0] sm:$0xff]   ;;  %427 = vmatprep.subr.bf16.mxu0 %v471_v0  ;;  %v476_v5 = vld [vmem:[%s646_s1 + $0xc8] sm:$0xff]   ;;  %v480_v9 = vld [vmem:[%s646_s1 + $0xd0] sm:$0xff]  }
   0x3   :  { %v473_v2 = vld [vmem:[%s646_s1] sm:$0xff]   ;;  %449 = vmatprep.subr.bf16.mxu1 %v472_v1  ;;  %v477_v6 = vld [vmem:[%s646_s1 + $0x8] sm:$0xff]   ;;  %v481_v10 = vld [vmem:[%s646_s1 + $0x10] sm:$0xff]  }
   0x4   :  { %v474_v3 = vld [vmem:[%s646_s1 + $0x80] sm:$0xff]   ;;  %428 = vmatpush3.bf16.msra.mxu0 %v473_v2  ;;  %v478_v7 = vld [vmem:[%s646_s1 + $0x88] sm:$0xff]   ;;  %v482_v11 = vld [vmem:[%s646_s1 + $0x90] sm:$0xff]  }
   0x5   :  { %450 = vmatpush3.bf16.msra.mxu1 %v474_v3  ;;  %429 = vmatprep.subr.bf16.mxu0 %v475_v4  ;;  %v483_v12 = vld [vmem:[%s646_s1 + $0x58] sm:$0xff]   ;;  %v487_v16 = vld [vmem:[%s646_s1 + $0x60] sm:$0xff]   ;;  %v491_v20 = vld [vmem:[%s646_s1 + $0x68] sm:$0xff]  }
   0x6   :  { %451 = vmatprep.subr.bf16.mxu1 %v476_v5  ;;  %v484_v13 = vld [vmem:[%s646_s1 + $0xd8] sm:$0xff]   ;;  %v488_v17 = vld [vmem:[%s646_s1 + $0xe0] sm:$0xff]   ;;  %v492_v21 = vld [vmem:[%s646_s1 + $0xe8] sm:$0xff]  }
   0x7   :  { %v485_v14 = vld [vmem:[%s646_s1 + $0x18] sm:$0xff]   ;;  %v489_v18 = vld [vmem:[%s646_s1 + $0x20] sm:$0xff]   ;;  %v493_v22 = vld [vmem:[%s646_s1 + $0x28] sm:$0xff]  }
   0x8   :  { %430 = vmatpush3.bf16.msra.mxu0 %v477_v6  ;;  %v486_v15 = vld [vmem:[%s646_s1 + $0x98] sm:$0xff]   ;;  %v490_v19 = vld [vmem:[%s646_s1 + $0xa0] sm:$0xff]   ;;  %v494_v23 = vld [vmem:[%s646_s1 + $0xa8] sm:$0xff]  }
   0x9   :  { %452 = vmatpush3.bf16.msra.mxu1 %v478_v7  ;;  %431 = vmatprep.subr.bf16.mxu0 %v479_v8  ;;  %v495_v24 = vld [vmem:[%s646_s1 + $0x70] sm:$0xff]   ;;  %v499_v28 = vld [vmem:[%s646_s1 + $0x78] sm:$0xff]   ;;  %v390_v38 = vld [vmem:[%s648_s2] ss:$0 sm:$0xff] }
   0xa   :  { %453 = vmatprep.subr.bf16.mxu1 %v480_v9  ;;  %v496_v25 = vld [vmem:[%s646_s1 + $0xf0] sm:$0xff]   ;;  %v500_v29 = vld [vmem:[%s646_s1 + $0xf8] sm:$0xff]  }
   0xb   :  { %v497_v26 = vld [vmem:[%s646_s1 + $0x30] sm:$0xff]   ;;  %v501_v30 = vld [vmem:[%s646_s1 + $0x38] sm:$0xff]  }
   0xc   :  { %432 = vmatpush3.bf16.msra.mxu0 %v481_v10  ;;  %v498_v27 = vld [vmem:[%s646_s1 + $0xb0] sm:$0xff]   ;;  %v502_v31 = vld [vmem:[%s646_s1 + $0xb8] sm:$0xff]  }
   0xd   :  { %454 = vmatpush3.bf16.msra.mxu1 %v482_v11  ;;  %433 = vmatprep.subr.bf16.mxu0 %v483_v12  ;;  %v503_v32 = vld [vmem:[%s647_s0] ss:$16 sps:$4 sm:$0xff]   ;;  %v505_v33 = vld [vmem:[%s647_s0 + $0x4] ss:$16 sps:$4 sm:$0xff]   ;;  %v506_v34 = vld [vmem:[%s647_s0 + $0x8] ss:$16 sps:$4 sm:$0xff]  }
   0xe   :  { %455 = vmatprep.subr.bf16.mxu1 %v484_v13  ;;  %v508_v35 = vld [vmem:[%s647_s0 + $0xc] ss:$16 sps:$4 sm:$0xff]   ;;  %334 = vmatprep.mubr.bf16.mxu0 %v505_v33 }
   0xf   :  { %375 = vmatprep.mubr.bf16.mxu1 %v508_v35 }
  0x10   :  { %434 = vmatpush3.bf16.msra.mxu0 %v485_v14 }
  0x11   :  { %456 = vmatpush3.bf16.msra.mxu1 %v486_v15  ;;  %435 = vmatprep.subr.bf16.mxu0 %v487_v16 }
  0x12   :  { %457 = vmatprep.subr.bf16.mxu1 %v488_v17 }
  0x14   :  { %436 = vmatpush3.bf16.msra.mxu0 %v489_v18 }
  0x15   :  { %458 = vmatpush3.bf16.msra.mxu1 %v490_v19  ;;  %437 = vmatprep.subr.bf16.mxu0 %v491_v20 }
  0x16   :  { %459 = vmatprep.subr.bf16.mxu1 %v492_v21 }
  0x18   :  { %438 = vmatpush3.bf16.msra.mxu0 %v493_v22 }
  0x19   :  { %460 = vmatpush3.bf16.msra.mxu1 %v494_v23  ;;  %439 = vmatprep.subr.bf16.mxu0 %v495_v24 }
  0x1a   :  { %461 = vmatprep.subr.bf16.mxu1 %v496_v25 }
  0x1c   :  { %440 = vmatpush3.bf16.msra.mxu0 %v497_v26 }
  0x1d   :  { %462 = vmatpush3.bf16.msra.mxu1 %v498_v27  ;;  %441 = vmatprep.subr.bf16.mxu0 %v499_v28 }
  0x1e   :  { %463 = vmatprep.subr.bf16.mxu1 %v500_v29 }
  0x20   :  { %442 = vmatpush3.bf16.msra.mxu0 %v501_v30 }
  0x21   :  { %464 = vmatpush3.bf16.msra.mxu1 %v502_v31 }
  0x23   :  { %335 = vmatmul.mubr.bf16.vlgmr.msra.gmra.mrb[0].mxu0 %v503_v32 }
  0x24   :  { %376 = vmatmul.mubr.bf16.vlgmr.msra.gmra.mrb[0].mxu1 %v506_v34 }
  0xf6   :  { %v443_v36 = vpop.f32.mrb[0].mxu0 }
  0xf7   :  { %v465_v37 = vpop.f32.mrb[0].mxu1  ;;  %v444_v39 = vpop.f32.mrb[1].mxu0 }
  0xf8   :  { %v445_v40 = vadd.f32 %v444_v39, %v443_v36  ;;  %v466_v41 = vpop.f32.mrb[1].mxu1  ;;  %v446_v42 = vpop.f32.mrb[2].mxu0 }
  0xf9   :  { %v467_v43 = vadd.f32 %v466_v41, %v465_v37  ;;  %v468_v44 = vpop.f32.mrb[2].mxu1  ;;  %v447_v45 = vpop.f32.mrb[3].mxu0 }
  0xfa   :  { %v337_v46 = vadd.f32 %v445_v40, %v390_v38  ;;  %v448_v47 = vadd.f32 %v447_v45, %v446_v42  ;;  %v469_v48 = vpop.f32.mrb[3].mxu1 }
  0xfb   :  { %v470_v49 = vadd.f32 %v469_v48, %v468_v44 }
  0xfc   :  { %v378_v50 = vadd.f32 %v467_v43, %v337_v46  ;;  %v340_v51 = vadd.f32 %v448_v47, %v390_v38 }
  0xfe   :  { %384 = vst [vmem:[%s649_s3] sm:$0xff] %v378_v50  ;;  %v381_v52 = vadd.f32 %v470_v49, %v340_v51 }
 0x100   :  { %385 = vst [vmem:[%s649_s3 + $0x8] sm:$0xff] %v381_v52 }

</bundles_post_ra>
